<compile_context>
chip_gen: v7x
topology: tpu7x:2x2x1
jax: 0.10.0
libtpu: 0.0.40
codegen_flags: <defaults>
</compile_context>

<pallas_src>
import functools

import jax
import jax.numpy as jnp
from jax import lax
from jax.experimental import pallas as pl
from jax.experimental.pallas import tpu as pltpu

VOCAB_SIZE = 32000
EMBED_DIM = 32
HIDDEN_DIM = 32


def _round_up(x, m):
    return (x + m - 1) // m * m


# --------------------------------------------------------------------------
# Pallas kernels
# --------------------------------------------------------------------------
def _gemm_kernel(x_ref, w_ref, *rest, relu, has_scale, has_res, single_k):
    # rest layout: [scale_ref?], bias_ref, [res_ref?], o_ref, [acc_ref?]
    idx = 0
    scale_ref = None
    if has_scale:
        scale_ref = rest[idx]; idx += 1
    bias_ref = rest[idx]; idx += 1
    res_ref = None
    if has_res:
        res_ref = rest[idx]; idx += 1
    o_ref = rest[idx]; idx += 1
    acc_ref = None if single_k else rest[idx]

    def epilogue(acc):
        if has_scale:
            acc = acc * scale_ref[...]
        acc = acc + bias_ref[...]
        if has_res:
            acc = acc + res_ref[...].astype(jnp.float32)   # fused residual add (bf16 stream)
        if relu:
            acc = jnp.maximum(acc, 0.0)
        o_ref[...] = acc.astype(o_ref.dtype)

    if single_k:
        epilogue(jnp.dot(x_ref[...], w_ref[...], preferred_element_type=jnp.float32))
    else:
        @pl.when(pl.program_id(2) == 0)
        def _():
            acc_ref[...] = jnp.zeros_like(acc_ref)

        acc_ref[...] += jnp.dot(x_ref[...], w_ref[...], preferred_element_type=jnp.float32)

        @pl.when(pl.program_id(2) == pl.num_programs(2) - 1)
        def _():
            epilogue(acc_ref[...])


def pallas_gemm(x, w, scale=None, bias=None, residual=None, *, relu=False,
                out_dtype=jnp.float32, tm=256, tn=None, tk=None):
    """out = act((x @ w) * scale + bias + residual), tiled over (M, N, K).

    x: (M, K), w: (K, N) — both cast to bf16 (f32 MXU accumulation).
    scale/bias: (N,) f32 broadcast over rows. residual: (M, N), streamed as bf16.
    M/K padded to multiples of 16 (bf16 sublane tiling); K optionally split into a
    trailing "arbitrary" grid axis with an accumulator scratch.
    """
    M, K = x.shape
    Kw, N = w.shape
    assert K == Kw
    if tn is None or tn > N:
        tn = N
    assert N % tn == 0

    x = x.astype(jnp.bfloat16)
    w = w.astype(jnp.bfloat16)

    if tk is None:
        Kp = _round_up(K, 16)
        tk = Kp
    else:
        tk = _round_up(min(tk, K), 16)
        Kp = _round_up(K, tk)
    if Kp != K:
        x = jnp.pad(x, ((0, 0), (0, Kp - K)))
        w = jnp.pad(w, ((0, Kp - K), (0, 0)))

    tm = min(tm, _round_up(M, 16))
    Mp = _round_up(M, tm)
    if Mp != M:
        x = jnp.pad(x, ((0, Mp - M), (0, 0)))
        if residual is not None:
            residual = jnp.pad(residual, ((0, Mp - M), (0, 0)))

    single_k = (Kp == tk)
    grid = (Mp // tm, N // tn, Kp // tk)

    operands = [x, w]
    in_specs = [
        pl.BlockSpec((tm, tk), lambda i, j, k: (i, k)),
        pl.BlockSpec((tk, tn), lambda i, j, k: (k, j)),
    ]
    if scale is not None:
        operands.append(scale.reshape(1, N).astype(jnp.float32))
        in_specs.append(pl.BlockSpec((1, tn), lambda i, j, k: (0, j)))
    operands.append(bias.reshape(1, N).astype(jnp.float32))
    in_specs.append(pl.BlockSpec((1, tn), lambda i, j, k: (0, j)))
    if residual is not None:
        operands.append(residual.astype(jnp.bfloat16))
        in_specs.append(pl.BlockSpec((tm, tn), lambda i, j, k: (i, j)))

    scratch = [] if single_k else [pltpu.VMEM((tm, tn), jnp.float32)]

    kernel = functools.partial(_gemm_kernel, relu=relu,
                               has_scale=scale is not None,
                               has_res=residual is not None,
                               single_k=single_k)
    out = pl.pallas_call(
        kernel,
        out_shape=jax.ShapeDtypeStruct((Mp, N), out_dtype),
        grid_spec=pltpu.PrefetchScalarGridSpec(
            num_scalar_prefetch=0,
            grid=grid,
            in_specs=in_specs,
            out_specs=pl.BlockSpec((tm, tn), lambda i, j, k: (i, j)),
            scratch_shapes=scratch,
        ),
        compiler_params=pltpu.CompilerParams(
            dimension_semantics=("parallel", "parallel", "arbitrary"),
        ),
    )(*operands)
    return out[:M] if Mp != M else out


def _lstm_kernel(x_ref, w_ih_ref, w_hh_ref, b_ref, o_ref, xp_sc, h_sc, c_sc):
    T = x_ref.shape[0]
    H = h_sc.shape[-1]

    # Prologue: hoisted input projection x_t @ W_ih + b for all timesteps (off the serial path).
    w_ih = w_ih_ref[...]
    b = b_ref[...]
    for t in range(T):
        xp_sc[t] = jnp.dot(x_ref[t], w_ih, preferred_element_type=jnp.float32) + b

    h_sc[...] = jnp.zeros_like(h_sc)
    c_sc[...] = jnp.zeros_like(c_sc)
    whh = w_hh_ref[...]                                    # (H, 4H) bf16, lane-full

    def step(t, carry):
        # gates = (x_t @ W_ih + b) + h_{t-1} @ W_hh ; one (B, 4H=128) matmul per step
        gates = xp_sc[t] + jnp.dot(h_sc[...], whh, preferred_element_type=jnp.float32)
        # One sigmoid + one tanh over the full (B, 128) vreg, then slice gates.
        sg = jax.nn.sigmoid(gates)
        th = jnp.tanh(gates)
        # PyTorch nn.LSTM gate column order: i, f, g, o
        i = sg[:, 0 * H:1 * H]
        f = sg[:, 1 * H:2 * H]
        g = th[:, 2 * H:3 * H]
        o = sg[:, 3 * H:4 * H]
        c = f * c_sc[...] + i * g
        h = o * jnp.tanh(c)
        c_sc[...] = c
        h_sc[...] = h.astype(jnp.bfloat16)                 # bf16 state: no cast on the matmul path
        o_ref[t] = h
        return carry

    lax.fori_loop(0, T, step, 0, unroll=True)


def pallas_lstm(x_tbe, w_ih, w_hh, b):
    """x_tbe: (T, B, E); w_ih: (E, 4H); w_hh: (H, 4H); b: (4H,) = b_ih + b_hh. Returns (T, B, H)."""
    T, B, E = x_tbe.shape
    G = w_ih.shape[1]
    H = G // 4
    return pl.pallas_call(
        _lstm_kernel,
        out_shape=jax.ShapeDtypeStruct((T, B, H), jnp.float32),
        grid_spec=pltpu.PrefetchScalarGridSpec(
            num_scalar_prefetch=0,
            grid=(1,),                                     # whole recurrence in one grid step
            in_specs=[pl.BlockSpec((T, B, E), lambda s: (0, 0, 0)),
                      pl.BlockSpec((E, G), lambda s: (0, 0)),
                      pl.BlockSpec((H, G), lambda s: (0, 0)),
                      pl.BlockSpec((1, G), lambda s: (0, 0))],
            out_specs=pl.BlockSpec((T, B, H), lambda s: (0, 0, 0)),
            scratch_shapes=[pltpu.VMEM((T, B, G), jnp.float32),
                            pltpu.VMEM((B, H), jnp.bfloat16),
                            pltpu.VMEM((B, H), jnp.float32)],
        ),
        compiler_params=pltpu.CompilerParams(
            dimension_semantics=("arbitrary",),
        ),
    )(x_tbe.astype(jnp.bfloat16), w_ih.astype(jnp.bfloat16),
      w_hh.astype(jnp.bfloat16), b.reshape(1, G).astype(jnp.float32))


# --------------------------------------------------------------------------
# Plain-JAX glue: im2col, pooling, model assembly
# --------------------------------------------------------------------------
def im2col(x, kh, kw, stride, pad):
    """x: NHWC bf16 -> (B*Ho*Wo, kh*kw*C) bf16 patches (row layout: (ki*kw+kj)*C + c)."""
    x = x.astype(jnp.bfloat16)
    B, H, W, C = x.shape
    xp = jnp.pad(x, ((0, 0), (pad, pad), (pad, pad), (0, 0)))
    Ho = (H + 2 * pad - kh) // stride + 1
    Wo = (W + 2 * pad - kw) // stride + 1
    cols = []
    for i in range(kh):
        for j in range(kw):
            cols.append(xp[:, i:i + stride * Ho:stride, j:j + stride * Wo:stride, :])
    patches = jnp.stack(cols, axis=-2)                     # (B, Ho, Wo, kh*kw, C)
    return patches.reshape(B * Ho * Wo, kh * kw * C), Ho, Wo


def maxpool_3x3_s2_p1(x):
    return lax.reduce_window(
        x, jnp.array(-jnp.inf, dtype=x.dtype), lax.max,
        window_dimensions=(1, 3, 3, 1),
        window_strides=(1, 2, 2, 1),
        padding=((0, 0), (1, 1), (1, 1), (0, 0)))


def conv_bn(x, p, stride, pad, relu, residual=None):
    B = x.shape[0]
    k = p["k"]
    patches, Ho, Wo = im2col(x, k, k, stride, pad)
    K = patches.shape[1]
    cout = p["w"].shape[1]
    res2d = residual.reshape(B * Ho * Wo, cout) if residual is not None else None
    # N split so weight-heavy layers get >=2 grid steps (pipelining + v7x megacore sharding).
    tn = 256 if cout >= 512 else (128 if cout == 256 else None)
    # K split for the large-K convs (layer3/layer4: K=2304/4608, 576 divides both exactly).
    tk = None
    if K >= 2048:
        for cand in (576, 512):
            if K % cand == 0:
                tk = cand
                break
    out = pallas_gemm(patches, p["w"], scale=p["scale"], bias=p["bias"],
                      residual=res2d, relu=relu, out_dtype=jnp.bfloat16,
                      tn=tn, tk=tk)
    return out.reshape(B, Ho, Wo, cout)


def basic_block(x, p):
    stride = p["stride"]
    out = conv_bn(x, p["conv1"], stride, 1, relu=True)
    identity = conv_bn(x, p["down"], stride, 0, relu=False) if "down" in p else x
    # conv2 + BN + residual-add + ReLU fused into one GEMM epilogue
    return conv_bn(out, p["conv2"], 1, 1, relu=True, residual=identity)


def encoder_forward(p, x_nhwc):
    x = conv_bn(x_nhwc, p["conv1"], stride=2, pad=3, relu=True)
    x = maxpool_3x3_s2_p1(x)
    for blocks in p["layers"]:
        for blk in blocks:
            x = basic_block(x, blk)
    pooled = jnp.mean(x.astype(jnp.float32), axis=(1, 2))  # AdaptiveAvgPool2d((1,1)) + flatten
    # Micro-GEMM (2x512x32): plain XLA dot, not worth a pallas_call.
    return jnp.dot(pooled, p["fc_w"]) + p["fc_b"]          # (B, embed_dim)


def caption_forward(params, images_nchw, captions):
    x = jnp.transpose(images_nchw, (0, 2, 3, 1))           # NCHW -> NHWC
    feats = encoder_forward(params["encoder"], x)          # (B, E)
    emb = jnp.take(params["embedding"], captions, axis=0)  # (B, T, E)
    inputs = jnp.concatenate([feats[:, None, :], emb[:, :-1, :]], axis=1)  # (B, T, E)
    x_tbe = jnp.transpose(inputs, (1, 0, 2))               # time-major (T, B, E)
    # LSTM: input projection folded into the kernel prologue; whole recurrence in one grid step.
    h_tbh = pallas_lstm(x_tbe, params["w_ih"], params["w_hh"], params["b_lstm"])  # (T, B, H)
    h = jnp.transpose(h_tbh, (1, 0, 2))                    # (B, T, H)
    B, T, H = h.shape
    logits = pallas_gemm(h.reshape(B * T, H), params["fc_out_w"],
                         bias=params["fc_out_b"], relu=False,
                         out_dtype=jnp.float32, tn=1280)
    return logits.reshape(B, T, VOCAB_SIZE)


# --------------------------------------------------------------------------
# Deterministic parameter init (synthetic; shapes follow the PyTorch module)
# --------------------------------------------------------------------------
class KeyGen:
    def __init__(self, key):
        self.key = key

    def __call__(self):
        self.key, sub = jax.random.split(self.key)
        return sub


def init_params(key):
    kg = KeyGen(key)

    def nrm(shape, s=0.05):
        return s * jax.random.normal(kg(), shape, dtype=jnp.float32)

    def conv_bn_params(cin, cout, k):
        w = nrm((cout, cin, k, k))                         # torch conv weight layout (O,I,kh,kw)
        gamma = 1.0 + nrm((cout,), 0.1)
        beta = nrm((cout,), 0.1)
        run_mean = nrm((cout,), 0.1)
        run_var = 1.0 + jnp.abs(nrm((cout,), 0.1))
        scale = gamma / jnp.sqrt(run_var + 1e-5)
        bias = beta - run_mean * scale
        wmat = jnp.transpose(w, (2, 3, 1, 0)).reshape(k * k * cin, cout)
        return dict(w=wmat.astype(jnp.bfloat16), scale=scale, bias=bias, k=k)

    # ResNet18 encoder
    layer_cfg = [(64, 64, 1), (64, 128, 2), (128, 256, 2), (256, 512, 2)]
    layers = []
    for cin, cout, stride in layer_cfg:
        blocks = []
        for bi in range(2):
            bin_ = cin if bi == 0 else cout
            bstride = stride if bi == 0 else 1
            blk = dict(conv1=conv_bn_params(bin_, cout, 3),
                       conv2=conv_bn_params(cout, cout, 3),
                       stride=bstride)
            if bstride != 1 or bin_ != cout:
                blk["down"] = conv_bn_params(bin_, cout, 1)
            blocks.append(blk)
        layers.append(blocks)

    encoder = dict(
        conv1=conv_bn_params(3, 64, 7),
        layers=layers,
        fc_w=nrm((512, EMBED_DIM)),                        # replaced encoder.fc: 512 -> embed_dim
        fc_b=nrm((EMBED_DIM,)),
    )

    params = dict(
        encoder=encoder,
        embedding=nrm((VOCAB_SIZE, EMBED_DIM)),            # nn.Embedding(vocab, embed_dim)
        # Fused nn.LSTM weights, gate column order [i | f | g | o] (PyTorch order), transposed.
        w_ih=nrm((EMBED_DIM, 4 * HIDDEN_DIM)).astype(jnp.bfloat16),
        w_hh=nrm((HIDDEN_DIM, 4 * HIDDEN_DIM)).astype(jnp.bfloat16),
        b_lstm=nrm((4 * HIDDEN_DIM,)) + nrm((4 * HIDDEN_DIM,)),   # b_ih + b_hh
        fc_out_w=nrm((HIDDEN_DIM, VOCAB_SIZE)).astype(jnp.bfloat16),  # nn.Linear(hidden, vocab)^T
        fc_out_b=nrm((VOCAB_SIZE,)),
    )
    return params


if __name__ == "__main__":
    key = jax.random.PRNGKey(0)
    pkey, ikey, ckey = jax.random.split(key, 3)

    params = init_params(pkey)
    images = jax.random.normal(ikey, (2, 3, 16, 16), dtype=jnp.float32)   # NCHW like PyTorch
    captions = jax.random.randint(ckey, (2, 8), 0, VOCAB_SIZE, dtype=jnp.int32)

    logits = caption_forward(params, images, captions)
    logits = jax.block_until_ready(logits)

    assert logits.shape == (2, 8, VOCAB_SIZE), logits.shape
    assert bool(jnp.all(jnp.isfinite(logits)))
    print("KERNEL_OK")
</pallas_src>

<mosaic_0001>
module attributes {stable_mosaic.version = 11 : i64} {
  func.func @_gemm_kernel(%arg0: i32, %arg1: i32, %arg2: i32, %arg3: memref<128x160xbf16, #tpu.memory_space<vmem>>, %arg4: memref<160x64xbf16, #tpu.memory_space<vmem>>, %arg5: memref<1x64xf32, #tpu.memory_space<vmem>>, %arg6: memref<1x64xf32, #tpu.memory_space<vmem>>, %arg7: memref<128x64xbf16, #tpu.memory_space<vmem>>) attributes {dimension_semantics = [#tpu.dimension_semantics<parallel>, #tpu.dimension_semantics<parallel>, #tpu.dimension_semantics<arbitrary>], iteration_bounds = array<i64: 1, 1, 1>, scalar_prefetch = 0 : i64, scratch_operands = 0 : i64, tpu.core_type = #tpu.core_type<tc>, window_params = [{transform_indices = @transform_0, window_bounds = array<i64: 128, 160>}, {transform_indices = @transform_1, window_bounds = array<i64: 160, 64>}, {transform_indices = @transform_2, window_bounds = array<i64: 1, 64>}, {transform_indices = @transform_3, window_bounds = array<i64: 1, 64>}, {transform_indices = @transform_4, window_bounds = array<i64: 128, 64>}]} {
    %c0 = arith.constant 0 : index
    %c0_0 = arith.constant 0 : index
    %0 = vector.load %arg3[%c0, %c0_0] : memref<128x160xbf16, #tpu.memory_space<vmem>>, vector<128x160xbf16>
    %c0_1 = arith.constant 0 : index
    %c0_2 = arith.constant 0 : index
    %1 = vector.load %arg4[%c0_1, %c0_2] : memref<160x64xbf16, #tpu.memory_space<vmem>>, vector<160x64xbf16>
    %cst = arith.constant dense<0.000000e+00> : vector<128x64xf32>
    %2 = tpu.matmul %0, %1, %cst {dimension_numbers = #tpu.dot_dimension_numbers<[1], [0], [0], [1], [0, 0, 1, 1], [], []>} : vector<128x160xbf16>, vector<160x64xbf16>, vector<128x64xf32> -> vector<128x64xf32>
    %c0_3 = arith.constant 0 : index
    %c0_4 = arith.constant 0 : index
    %3 = vector.load %arg5[%c0_3, %c0_4] : memref<1x64xf32, #tpu.memory_space<vmem>>, vector<1x64xf32>
    %4 = vector.broadcast %3 : vector<1x64xf32> to vector<128x64xf32>
    %5 = arith.mulf %2, %4 : vector<128x64xf32>
    %c0_5 = arith.constant 0 : index
    %c0_6 = arith.constant 0 : index
    %6 = vector.load %arg6[%c0_5, %c0_6] : memref<1x64xf32, #tpu.memory_space<vmem>>, vector<1x64xf32>
    %7 = vector.broadcast %6 : vector<1x64xf32> to vector<128x64xf32>
    %8 = arith.addf %5, %7 : vector<128x64xf32>
    %cst_7 = arith.constant 0.000000e+00 : f32
    %9 = vector.broadcast %cst_7 : f32 to vector<128x64xf32>
    %10 = arith.maximumf %8, %9 : vector<128x64xf32>
    %11 = arith.truncf %10 : vector<128x64xf32> to vector<128x64xbf16>
    %c0_8 = arith.constant 0 : index
    %c0_9 = arith.constant 0 : index
    %12 = vector.load %arg7[%c0_8, %c0_9] : memref<128x64xbf16, #tpu.memory_space<vmem>>, vector<128x64xbf16>
    tpu.vector_store %arg7[%c0_8, %c0_9], %11 {strides = array<i32>} : memref<128x64xbf16, #tpu.memory_space<vmem>>, vector<128x64xbf16>,
    return
  }
  func.func @transform_0(%arg0: i32, %arg1: i32, %arg2: i32) -> (i32, i32) {
    %c0_i32 = arith.constant 0 : i32
    return %arg0, %arg2 : i32, i32
  }
  func.func @transform_1(%arg0: i32, %arg1: i32, %arg2: i32) -> (i32, i32) {
    %c0_i32 = arith.constant 0 : i32
    return %arg2, %arg1 : i32, i32
  }
  func.func @transform_2(%arg0: i32, %arg1: i32, %arg2: i32) -> (i32, i32) {
    %c0_i32 = arith.constant 0 : i32
    %c0_i32_0 = arith.constant 0 : i32
    return %c0_i32, %arg1 : i32, i32
  }
  func.func @transform_3(%arg0: i32, %arg1: i32, %arg2: i32) -> (i32, i32) {
    %c0_i32 = arith.constant 0 : i32
    %c0_i32_0 = arith.constant 0 : i32
    return %c0_i32, %arg1 : i32, i32
  }
  func.func @transform_4(%arg0: i32, %arg1: i32, %arg2: i32) -> (i32, i32) {
    %c0_i32 = arith.constant 0 : i32
    return %arg0, %arg1 : i32, i32
  }
}

</mosaic_0001>

<bundles_post_ra>
// kernel: tpu_custom_call.1
= control target key start
LH: loop header
LB: loop body
LE: loop exit
PB: predicated region body
PF: predicated region fallthrough
CT: control target
= control target key end

     0   :  { %v578_v0 = vmov 0   ;;  %vm186_vm0 = vcmask 261120   ;;  %vm434_vm1 = vcmask 519168   ;;  %s796_s1 = inlined_call_operand.vmem [shape: bf16[160,64], index: 1, kind: input, shape index: {}]   ;;  %s797_s0 = inlined_call_operand.vmem [shape: bf16[128,160], index: 0, kind: input, shape index: {}]   ;;  %s798_s2 = inlined_call_operand.vmem [shape: f32[1,64], index: 2, kind: input, shape index: {}]   ;;  %s799_s3 = inlined_call_operand.vmem [shape: f32[1,64], index: 3, kind: input, shape index: {}]   ;;  %s800_s4 = inlined_call_operand.vmem [shape: bf16[128,64], index: 4, kind: output, shape index: {}]  }
   0x1   :  { %211 = vmatprep.subr.bf16.mxu0 %v578_v0  ;;  %523 = vmatprep.subr.bf16.mxu1 %v578_v0  ;;  %v544_v1 = vld [vmem:[%s796_s1] sm:$0xff]   ;;  %v545_v2 = vld [vmem:[%s796_s1 + $0x8] sm:$0xff]   ;;  %v546_v3 = vld [vmem:[%s796_s1 + $0x10] sm:$0xff]  }
   0x2   :  { %212 = vmatpush1.bf16.msra.mxu0 %v544_v1  ;;  %533 = vmatpush1.bf16.msra.mxu1 %v544_v1  ;;  %v547_v4 = vld [vmem:[%s796_s1 + $0x18] sm:$0xff]   ;;  %v556_v5 = vld [vmem:[%s797_s0 + $0x4] ss:$8 sps:$4 sm:$0xff]   ;;  %v550_v9 = vld [vmem:[%s796_s1 + $0x30] sm:$0xff]  }
   0x3   :  { %213 = vmatprep.subr.bf16.mxu0 %v578_v0  ;;  %524 = vmatprep.subr.bf16.mxu1 %v578_v0  ;;  %v559_v6 = vld [vmem:[%s797_s0 + $0x44] ss:$8 sps:$4 sm:$0xff]   ;;  %v551_v10 = vld [vmem:[%s796_s1 + $0x38] sm:$0xff]   ;;  %v554_v13 = vld [vmem:[%s797_s0] ss:$8 sps:$4 sm:$0xff]  }
   0x4   :  { %481 = vmatprep.mubr.msk.bf16.mxu0 %vm186_vm0, %v556_v5  ;;  %v548_v7 = vld [vmem:[%s796_s1 + $0x20] sm:$0xff]   ;;  %485 = vmatprep.mubr.msk.bf16.mxu1 %vm186_vm0, %v559_v6  ;;  %v549_v8 = vld [vmem:[%s796_s1 + $0x28] sm:$0xff]   ;;  %v560_v15 = vld [vmem:[%s797_s0 + $0x14] ss:$8 sps:$4 sm:$0xff]  }
   0x5   :  { %v552_v11 = vld [vmem:[%s796_s1 + $0x40] sm:$0xff]   ;;  %v553_v12 = vld [vmem:[%s796_s1 + $0x48] sm:$0xff]   ;;  %v562_v16 = vld [vmem:[%s797_s0 + $0x54] ss:$8 sps:$4 sm:$0xff]  }
   0x6   :  { %214 = vmatpush1.bf16.msra.mxu0 %v545_v2  ;;  %534 = vmatpush1.bf16.msra.mxu1 %v545_v2  ;;  %v557_v14 = vld [vmem:[%s797_s0 + $0x40] ss:$8 sps:$4 sm:$0xff]   ;;  %v564_v17 = vld [vmem:[%s797_s0 + $0x10] ss:$8 sps:$4 sm:$0xff]   ;;  %v566_v19 = vld [vmem:[%s797_s0 + $0x24] ss:$8 sps:$4 sm:$0xff]  }
   0x7   :  { %215 = vmatprep.subr.bf16.mxu0 %v578_v0  ;;  %525 = vmatprep.subr.bf16.mxu1 %v578_v0  ;;  %v565_v18 = vld [vmem:[%s797_s0 + $0x50] ss:$8 sps:$4 sm:$0xff]   ;;  %v568_v20 = vld [vmem:[%s797_s0 + $0x64] ss:$8 sps:$4 sm:$0xff]   ;;  %v570_v21 = vld [vmem:[%s797_s0 + $0x20] ss:$8 sps:$4 sm:$0xff]  }
   0x8   :  { %v571_v22 = vld [vmem:[%s797_s0 + $0x60] ss:$8 sps:$4 sm:$0xff]   ;;  %v572_v23 = vld [vmem:[%s797_s0 + $0x34] ss:$8 sps:$4 sm:$0xff]   ;;  %v576_v25 = vld [vmem:[%s797_s0 + $0x30] ss:$8 sps:$4 sm:$0xff]  }
   0x9   :  { %v574_v24 = vld [vmem:[%s797_s0 + $0x74] ss:$8 sps:$4 sm:$0xff]   ;;  %v577_v26 = vld [vmem:[%s797_s0 + $0x70] ss:$8 sps:$4 sm:$0xff]   ;;  %v693_v27 = vld [vmem:[%s798_s2] ss:$0 sm:$0xff] }
   0xa   :  { %216 = vmatpush1.bf16.msra.mxu0 %v546_v3  ;;  %535 = vmatpush1.bf16.msra.mxu1 %v546_v3  ;;  %v698_v29 = vld [vmem:[%s799_s3] ss:$0 sm:$0xff] }
   0xb   :  { %217 = vmatprep.subr.bf16.mxu0 %v578_v0  ;;  %526 = vmatprep.subr.bf16.mxu1 %v578_v0 }
   0xe   :  { %218 = vmatpush1.bf16.msra.mxu0 %v547_v4  ;;  %536 = vmatpush1.bf16.msra.mxu1 %v547_v4 }
   0xf   :  { %219 = vmatprep.subr.bf16.mxu0 %v578_v0  ;;  %527 = vmatprep.subr.bf16.mxu1 %v578_v0 }
  0x12   :  { %220 = vmatpush1.bf16.msra.mxu0 %v548_v7  ;;  %537 = vmatpush1.bf16.msra.mxu1 %v548_v7 }
  0x13   :  { %221 = vmatprep.subr.bf16.mxu0 %v578_v0  ;;  %528 = vmatprep.subr.bf16.mxu1 %v578_v0 }
  0x16   :  { %222 = vmatpush1.bf16.msra.mxu0 %v549_v8  ;;  %538 = vmatpush1.bf16.msra.mxu1 %v549_v8 }
  0x17   :  { %223 = vmatprep.subr.bf16.mxu0 %v578_v0  ;;  %529 = vmatprep.subr.bf16.mxu1 %v578_v0 }
  0x1a   :  { %224 = vmatpush1.bf16.msra.mxu0 %v550_v9  ;;  %539 = vmatpush1.bf16.msra.mxu1 %v550_v9 }
  0x1b   :  { %225 = vmatprep.subr.bf16.mxu0 %v578_v0  ;;  %530 = vmatprep.subr.bf16.mxu1 %v578_v0 }
  0x1e   :  { %226 = vmatpush1.bf16.msra.mxu0 %v551_v10  ;;  %540 = vmatpush1.bf16.msra.mxu1 %v551_v10 }
  0x1f   :  { %227 = vmatprep.subr.bf16.mxu0 %v578_v0  ;;  %531 = vmatprep.subr.bf16.mxu1 %v578_v0 }
  0x22   :  { %228 = vmatpush1.bf16.msra.mxu0 %v552_v11  ;;  %541 = vmatpush1.bf16.msra.mxu1 %v552_v11 }
  0x23   :  { %229 = vmatprep.subr.bf16.mxu0 %v578_v0  ;;  %532 = vmatprep.subr.bf16.mxu1 %v578_v0 }
  0x26   :  { %230 = vmatpush1.bf16.msra.mxu0 %v553_v12  ;;  %542 = vmatpush1.bf16.msra.mxu1 %v553_v12 }
  0x29   :  { %244 = vmatmul.mubr.bf16.vlgmr.msra.gmra.mrb[0].mxu0 %v554_v13  ;;  %276 = vmatmul.mubr.bf16.vlgmr.msra.gmra.mrb[0].mxu1 %v557_v14 }
  0x2a   :  { %482 = vmatprep.mubr.msk.bf16.mxu0 %vm186_vm0, %v560_v15  ;;  %486 = vmatprep.mubr.msk.bf16.mxu1 %vm186_vm0, %v562_v16 }
  0x31   :  { %252 = vmatmul.mubr.bf16.gmra.mrb[4].mxu0 %v564_v17  ;;  %284 = vmatmul.mubr.bf16.gmra.mrb[4].mxu1 %v565_v18 }
  0x32   :  { %483 = vmatprep.mubr.msk.bf16.mxu0 %vm186_vm0, %v566_v19  ;;  %487 = vmatprep.mubr.msk.bf16.mxu1 %vm186_vm0, %v568_v20 }
  0x39   :  { %260 = vmatmul.mubr.bf16.gmra.mrb[8].mxu0 %v570_v21  ;;  %292 = vmatmul.mubr.bf16.gmra.mrb[8].mxu1 %v571_v22 }
  0x3a   :  { %484 = vmatprep.mubr.msk.bf16.mxu0 %vm186_vm0, %v572_v23  ;;  %488 = vmatprep.mubr.msk.bf16.mxu1 %vm186_vm0, %v574_v24 }
  0x41   :  { %268 = vmatmul.mubr.bf16.gmra.mrb[12].mxu0 %v576_v25  ;;  %300 = vmatmul.mubr.bf16.gmra.mrb[12].mxu1 %v577_v26 }
  0xfc   :  { %v245_v28 = vpop.f32.mrb[0].mxu0  ;;  %v277_v30 = vpop.f32.mrb[0].mxu1 }
  0xfd   :  { %v315_v31 = vmul.f32 %v693_v27, %v245_v28  ;;  %v323_v32 = vmul.f32 %v693_v27, %v277_v30  ;;  %v247_v33 = vpop.f32.mrb[1].mxu0  ;;  %v279_v34 = vpop.f32.mrb[1].mxu1 }
  0xfe   :  { %v248_v35 = vpop.f32.mrb[2].mxu0  ;;  %v280_v36 = vpop.f32.mrb[2].mxu1 }
  0xff   :  { %v338_v37 = vadd.f32 %v698_v29, %v315_v31  ;;  %v346_v38 = vadd.f32 %v698_v29, %v323_v32  ;;  %v316_v39 = vmul.f32 %v693_v27, %v248_v35  ;;  %v324_v40 = vmul.f32 %v693_v27, %v280_v36  ;;  %v250_v41 = vpop.f32.mrb[3].mxu0  ;;  %v282_v42 = vpop.f32.mrb[3].mxu1 }
 0x101   :  { %v354_v43 = vmax.f32 %v338_v37, 0.0  ;;  %v362_v44 = vmax.f32 %v346_v38, 0.0  ;;  %v339_v45 = vadd.f32 %v698_v29, %v316_v39  ;;  %v347_v46 = vadd.f32 %v698_v29, %v324_v40 }
 0x103   :  { %v507_v47 = vpack.c.bf16 %v354_v43, %v354_v43  ;;  %v515_v48 = vpack.c.bf16 %v362_v44, %v362_v44  ;;  %v355_v49 = vmax.f32 %v339_v45, 0.0  ;;  %v363_v50 = vmax.f32 %v347_v46, 0.0 }
 0x104   :  { %v253_v51 = vpop.f32.mrb[4].mxu0  ;;  %v285_v52 = vpop.f32.mrb[4].mxu1 }
 0x105   :  { %435 = vst.msk [vmem:[%s800_s4] sm:$0xf] %vm434_vm1, %v507_v47  ;;  %443 = vst.msk [vmem:[%s800_s4 + $0x20] sm:$0xf] %vm434_vm1, %v515_v48  ;;  %v508_v53 = vpack.c.bf16 %v355_v49, %v355_v49  ;;  %v516_v54 = vpack.c.bf16 %v363_v50, %v363_v50  ;;  %v317_v55 = vmul.f32 %v693_v27, %v253_v51  ;;  %v255_v57 = vpop.f32.mrb[5].mxu0  ;;  %v287_v58 = vpop.f32.mrb[5].mxu1 }
 0x106   :  { %v325_v56 = vmul.f32 %v693_v27, %v285_v52  ;;  %v256_v59 = vpop.f32.mrb[6].mxu0  ;;  %v288_v60 = vpop.f32.mrb[6].mxu1 }
 0x107   :  { %436 = vst.msk [vmem:[%s800_s4 + $0x4] sm:$0xf] %vm434_vm1, %v508_v53  ;;  %444 = vst.msk [vmem:[%s800_s4 + $0x24] sm:$0xf] %vm434_vm1, %v516_v54  ;;  %v340_v61 = vadd.f32 %v698_v29, %v317_v55  ;;  %v318_v63 = vmul.f32 %v693_v27, %v256_v59  ;;  %v326_v0 = vmul.f32 %v693_v27, %v288_v60  ;;  %v258_v1 = vpop.f32.mrb[7].mxu0  ;;  %v290_v2 = vpop.f32.mrb[7].mxu1 }
 0x108   :  { %v348_v62 = vadd.f32 %v698_v29, %v325_v56 }
 0x109   :  { %v356_v3 = vmax.f32 %v340_v61, 0.0  ;;  %v341_v5 = vadd.f32 %v698_v29, %v318_v63  ;;  %v349_v6 = vadd.f32 %v698_v29, %v326_v0 }
 0x10a   :  { %v364_v4 = vmax.f32 %v348_v62, 0.0 }
 0x10b   :  { %v509_v7 = vpack.c.bf16 %v356_v3, %v356_v3  ;;  %v357_v9 = vmax.f32 %v341_v5, 0.0  ;;  %v365_v10 = vmax.f32 %v349_v6, 0.0 }
 0x10c   :  { %v517_v8 = vpack.c.bf16 %v364_v4, %v364_v4  ;;  %v261_v11 = vpop.f32.mrb[8].mxu0  ;;  %v293_v12 = vpop.f32.mrb[8].mxu1 }
 0x10d   :  { %437 = vst.msk [vmem:[%s800_s4 + $0x8] sm:$0xf] %vm434_vm1, %v509_v7  ;;  %v510_v13 = vpack.c.bf16 %v357_v9, %v357_v9  ;;  %v518_v14 = vpack.c.bf16 %v365_v10, %v365_v10  ;;  %v319_v15 = vmul.f32 %v693_v27, %v261_v11  ;;  %v327_v16 = vmul.f32 %v693_v27, %v293_v12  ;;  %v263_v17 = vpop.f32.mrb[9].mxu0  ;;  %v295_v18 = vpop.f32.mrb[9].mxu1 }
 0x10e   :  { %445 = vst.msk [vmem:[%s800_s4 + $0x28] sm:$0xf] %vm434_vm1, %v517_v8  ;;  %v264_v19 = vpop.f32.mrb[10].mxu0  ;;  %v296_v20 = vpop.f32.mrb[10].mxu1 }
 0x10f   :  { %438 = vst.msk [vmem:[%s800_s4 + $0xc] sm:$0xf] %vm434_vm1, %v510_v13  ;;  %446 = vst.msk [vmem:[%s800_s4 + $0x2c] sm:$0xf] %vm434_vm1, %v518_v14  ;;  %v342_v21 = vadd.f32 %v698_v29, %v319_v15  ;;  %v350_v22 = vadd.f32 %v698_v29, %v327_v16  ;;  %v320_v23 = vmul.f32 %v693_v27, %v264_v19  ;;  %v266_v25 = vpop.f32.mrb[11].mxu0  ;;  %v298_v26 = vpop.f32.mrb[11].mxu1 }
 0x110   :  { %v328_v24 = vmul.f32 %v693_v27, %v296_v20 }
 0x111   :  { %v358_v28 = vmax.f32 %v342_v21, 0.0  ;;  %v366_v30 = vmax.f32 %v350_v22, 0.0  ;;  %v343_v31 = vadd.f32 %v698_v29, %v320_v23 }
 0x112   :  { %v351_v32 = vadd.f32 %v698_v29, %v328_v24 }
 0x113   :  { %v511_v33 = vpack.c.bf16 %v358_v28, %v358_v28  ;;  %v519_v34 = vpack.c.bf16 %v366_v30, %v366_v30  ;;  %v359_v35 = vmax.f32 %v343_v31, 0.0 }
 0x114   :  { %v367_v36 = vmax.f32 %v351_v32, 0.0  ;;  %v269_v37 = vpop.f32.mrb[12].mxu0  ;;  %v301_v38 = vpop.f32.mrb[12].mxu1 }
 0x115   :  { %439 = vst.msk [vmem:[%s800_s4 + $0x10] sm:$0xf] %vm434_vm1, %v511_v33  ;;  %447 = vst.msk [vmem:[%s800_s4 + $0x30] sm:$0xf] %vm434_vm1, %v519_v34  ;;  %v512_v39 = vpack.c.bf16 %v359_v35, %v359_v35  ;;  %v321_v41 = vmul.f32 %v693_v27, %v269_v37  ;;  %v329_v42 = vmul.f32 %v693_v27, %v301_v38  ;;  %v271_v43 = vpop.f32.mrb[13].mxu0  ;;  %v303_v44 = vpop.f32.mrb[13].mxu1 }
 0x116   :  { %v520_v40 = vpack.c.bf16 %v367_v36, %v367_v36  ;;  %v272_v45 = vpop.f32.mrb[14].mxu0  ;;  %v304_v46 = vpop.f32.mrb[14].mxu1 }
 0x117   :  { %440 = vst.msk [vmem:[%s800_s4 + $0x14] sm:$0xf] %vm434_vm1, %v512_v39  ;;  %v344_v47 = vadd.f32 %v698_v29, %v321_v41  ;;  %v352_v48 = vadd.f32 %v698_v29, %v329_v42  ;;  %v322_v49 = vmul.f32 %v693_v27, %v272_v45  ;;  %v330_v50 = vmul.f32 %v693_v27, %v304_v46  ;;  %v274_v51 = vpop.f32.mrb[15].mxu0  ;;  %v306_v52 = vpop.f32.mrb[15].mxu1 }
 0x118   :  { %448 = vst.msk [vmem:[%s800_s4 + $0x34] sm:$0xf] %vm434_vm1, %v520_v40 }
 0x119   :  { %v360_v53 = vmax.f32 %v344_v47, 0.0  ;;  %v368_v54 = vmax.f32 %v352_v48, 0.0  ;;  %v345_v55 = vadd.f32 %v698_v29, %v322_v49  ;;  %v353_v56 = vadd.f32 %v698_v29, %v330_v50 }
 0x11b   :  { %v513_v57 = vpack.c.bf16 %v360_v53, %v360_v53  ;;  %v521_v58 = vpack.c.bf16 %v368_v54, %v368_v54  ;;  %v361_v59 = vmax.f32 %v345_v55, 0.0  ;;  %v369_v60 = vmax.f32 %v353_v56, 0.0 }
 0x11d   :  { %441 = vst.msk [vmem:[%s800_s4 + $0x18] sm:$0xf] %vm434_vm1, %v513_v57  ;;  %449 = vst.msk [vmem:[%s800_s4 + $0x38] sm:$0xf] %vm434_vm1, %v521_v58  ;;  %v514_v27 = vpack.c.bf16 %v361_v59, %v361_v59  ;;  %v522_v61 = vpack.c.bf16 %v369_v60, %v369_v60 }
 0x11f   :  { %442 = vst.msk [vmem:[%s800_s4 + $0x1c] sm:$0xf] %vm434_vm1, %v514_v27  ;;  %450 = vst.msk [vmem:[%s800_s4 + $0x3c] sm:$0xf] %vm434_vm1, %v522_v61 }

</bundles_post_ra>
